<compile_context>
chip_gen: v5e
topology: v5e:2x2
jax: 0.10.0
libtpu: 0.0.40
codegen_flags: <defaults>
</compile_context>

<pallas_src>
import functools

import jax
import jax.numpy as jnp
from jax.experimental import pallas as pl
from jax.experimental.pallas import tpu as pltpu

LANE = 128       # lane width of a vreg (last-dim alignment for the final store)
SUBPACK = 16     # bf16 packs (16, 128) per vreg -> pad quantum for K / batch
BN_EPS = 1e-5


def _round_up(x, m):
    return (x + m - 1) // m * m


# ---------------------------------------------------------------------------
# Fused decoder kernel: 7 x  act(h @ W + b), everything resident in VMEM/vregs.
# refs = (x, w0..w6, b0..b6, out)
# ---------------------------------------------------------------------------
def _decoder_kernel(*refs, n_layers):
    x_ref = refs[0]
    w_refs = refs[1:1 + n_layers]
    b_refs = refs[1 + n_layers:1 + 2 * n_layers]
    o_ref = refs[1 + 2 * n_layers]

    h = x_ref[...]                                      # (Bp, K0) bf16
    for i in range(n_layers):                           # static unroll: 7 tiny matmuls
        y = jnp.dot(h.astype(jnp.bfloat16), w_refs[i][...],
                    preferred_element_type=jnp.float32) + b_refs[i][...]
        if i < n_layers - 1:
            h = jnp.tanh(y)                             # f32 epilogue (v5e-safe)
        else:
            # sigmoid head: reciprocal on the EUP slot instead of a VPU divide
            h = pl.reciprocal(1.0 + jnp.exp(-y), approx=True)
    o_ref[...] = h                                      # (Bp, 128) f32, lane-dense


# ---------------------------------------------------------------------------
# Parameter construction (raw, PyTorch-layout) and one-time fusion/padding.
# ---------------------------------------------------------------------------
def init_raw_params(key, nc, ngf, nz):
    """Raw ConvTranspose2d/BatchNorm2d parameters in PyTorch layout."""
    chans = [nz, ngf * 32, ngf * 16, ngf * 8, ngf * 4, ngf * 2, ngf, nc]
    n_layers = len(chans) - 1
    params = []
    for i in range(n_layers):
        cin, cout = chans[i], chans[i + 1]
        key, kw, kb, kg, kbt, km, kv = jax.random.split(key, 7)
        std = 1.0 / jnp.sqrt(cin * 9.0)
        weight = jax.random.normal(kw, (cin, cout, 3, 3), jnp.float32) * std
        bias = jax.random.normal(kb, (cout,), jnp.float32) * std
        if i < n_layers - 1:   # every stage but the last has BN + Tanh
            gamma = 1.0 + 0.1 * jax.random.normal(kg, (cout,), jnp.float32)
            beta = 0.1 * jax.random.normal(kbt, (cout,), jnp.float32)
            rmean = 0.1 * jax.random.normal(km, (cout,), jnp.float32)
            rvar = 1.0 + 0.1 * jnp.abs(jax.random.normal(kv, (cout,), jnp.float32))
            bn = (gamma, beta, rmean, rvar)
        else:
            bn = None
        params.append(dict(weight=weight, bias=bias, bn=bn))
    return params, key


def fuse_and_pad_params(raw_params, eps=BN_EPS):
    """Fold BN into the center-tap matmul, pad, cast W to bf16.  Done ONCE.

    Padding scheme: contraction dim (cin) -> multiple of 16 (bf16 packing);
    intermediate output dims -> multiple of 16 (they never touch HBM, the
    activation value width then equals the next layer's K exactly); final output
    dim -> 128 so the single HBM store is lane-dense.
    """
    n_layers = len(raw_params)
    fused = []
    for i, p in enumerate(raw_params):
        wc = p["weight"][:, :, 1, 1]          # (Cin, Cout) center tap
        b = p["bias"]
        if p["bn"] is not None:
            gamma, beta, rmean, rvar = p["bn"]
            scale = gamma / jnp.sqrt(rvar + eps)
            shift = beta - rmean * scale
            w_eff = wc * scale[None, :]
            b_eff = b * scale + shift
        else:
            w_eff, b_eff = wc, b
        cin, cout = w_eff.shape
        last = i == n_layers - 1
        kp = _round_up(cin, SUBPACK)
        np_ = _round_up(cout, LANE if last else SUBPACK)
        w_pad = jnp.zeros((kp, np_), jnp.float32).at[:cin, :cout].set(w_eff)
        b_pad = jnp.zeros((1, np_), jnp.float32).at[:, :cout].set(b_eff)
        fused.append(dict(w=w_pad.astype(jnp.bfloat16), b=b_pad,
                          cin=cin, cout=cout))
    # chain consistency: layer i's K width == layer i-1's padded output width
    for i in range(1, n_layers):
        assert fused[i]["w"].shape[0] == fused[i - 1]["w"].shape[1]
    return fused


# ---------------------------------------------------------------------------
# Full InversionBLUR forward (single fused pallas_call) + pure-JAX reference.
# ---------------------------------------------------------------------------
def make_forward(fused_params, nz, nc):
    ws = tuple(p["w"] for p in fused_params)
    bs = tuple(p["b"] for p in fused_params)
    n_layers = len(fused_params)
    k0 = ws[0].shape[0]
    n_last = ws[-1].shape[1]
    assert k0 >= nz and n_last >= nc

    kernel = functools.partial(_decoder_kernel, n_layers=n_layers)
    vmem = pl.BlockSpec(memory_space=pltpu.MemorySpace.VMEM)  # whole array in VMEM

    @jax.jit
    def forward(x):
        h = x.reshape(-1, nz)                            # x.view(-1, nz, 1, 1)
        B = h.shape[0]
        Bp = _round_up(B, SUBPACK)
        x_pad = jnp.pad(h, ((0, Bp - B), (0, k0 - nz))).astype(jnp.bfloat16)
        out = pl.pallas_call(
            kernel,
            out_shape=jax.ShapeDtypeStruct((Bp, n_last), jnp.float32),
            in_specs=[vmem] * (1 + 2 * n_layers),
            out_specs=vmem,
        )(x_pad, *ws, *bs)
        return out[:B, :nc].reshape(B, nc, 1, 1)

    return forward


def reference_forward(x, raw_params, nz, eps=BN_EPS):
    h = x.reshape(-1, nz).astype(jnp.float32)
    for p in raw_params:
        wc = p["weight"][:, :, 1, 1]
        h = h @ wc + p["bias"]
        if p["bn"] is not None:
            gamma, beta, rmean, rvar = p["bn"]
            h = (h - rmean) / jnp.sqrt(rvar + eps) * gamma + beta
            h = jnp.tanh(h)
        else:
            h = jax.nn.sigmoid(h)
    nc = raw_params[-1]["bias"].shape[0]
    return h.reshape(-1, nc, 1, 1)


if __name__ == "__main__":
    # Small shapes consistent with the module: nc=3, ngf=4, nz=32, batch=8.
    nc, ngf, nz = 3, 4, 32
    truncation, c = 6, 50.0    # unused by forward(); kept for parity
    B = 8

    key = jax.random.PRNGKey(0)
    key, kx = jax.random.split(key)
    x = jax.random.normal(kx, (B, nz, 1, 1), dtype=jnp.float32)

    raw_params, key = init_raw_params(key, nc, ngf, nz)
    fused_params = fuse_and_pad_params(raw_params)
    forward = make_forward(fused_params, nz, nc)

    out = forward(x)
    out = jax.block_until_ready(out)

    ref = reference_forward(x, raw_params, nz)
    assert out.shape == (B, nc, 1, 1)
    # bf16 matmul inputs + approx reciprocal vs f32 reference: small abs error
    assert float(jnp.max(jnp.abs(out - ref))) < 3e-2

    print("KERNEL_OK")
</pallas_src>

<mosaic_0001>
module attributes {stable_mosaic.version = 11 : i64} {
  func.func @_decoder_kernel(%arg0: memref<16x32xbf16, #tpu.memory_space<vmem>>, %arg1: memref<32x128xbf16, #tpu.memory_space<vmem>>, %arg2: memref<128x64xbf16, #tpu.memory_space<vmem>>, %arg3: memref<64x32xbf16, #tpu.memory_space<vmem>>, %arg4: memref<32x16xbf16, #tpu.memory_space<vmem>>, %arg5: memref<16x16xbf16, #tpu.memory_space<vmem>>, %arg6: memref<16x16xbf16, #tpu.memory_space<vmem>>, %arg7: memref<16x128xbf16, #tpu.memory_space<vmem>>, %arg8: memref<1x128xf32, #tpu.memory_space<vmem>>, %arg9: memref<1x64xf32, #tpu.memory_space<vmem>>, %arg10: memref<1x32xf32, #tpu.memory_space<vmem>>, %arg11: memref<1x16xf32, #tpu.memory_space<vmem>>, %arg12: memref<1x16xf32, #tpu.memory_space<vmem>>, %arg13: memref<1x16xf32, #tpu.memory_space<vmem>>, %arg14: memref<1x128xf32, #tpu.memory_space<vmem>>, %arg15: memref<16x128xf32, #tpu.memory_space<vmem>>) attributes {dimension_semantics = [], scalar_prefetch = 0 : i64, scratch_operands = 0 : i64, tpu.core_type = #tpu.core_type<tc>} {
    %c0 = arith.constant 0 : index
    %c0_0 = arith.constant 0 : index
    %0 = vector.load %arg0[%c0, %c0_0] : memref<16x32xbf16, #tpu.memory_space<vmem>>, vector<16x32xbf16>
    %c0_1 = arith.constant 0 : index
    %c0_2 = arith.constant 0 : index
    %1 = vector.load %arg1[%c0_1, %c0_2] : memref<32x128xbf16, #tpu.memory_space<vmem>>, vector<32x128xbf16>
    %cst = arith.constant dense<0.000000e+00> : vector<16x128xf32>
    %2 = tpu.matmul %0, %1, %cst {dimension_numbers = #tpu.dot_dimension_numbers<[1], [0], [0], [1], [0, 0, 1, 1], [], []>} : vector<16x32xbf16>, vector<32x128xbf16>, vector<16x128xf32> -> vector<16x128xf32>
    %c0_3 = arith.constant 0 : index
    %c0_4 = arith.constant 0 : index
    %3 = vector.load %arg8[%c0_3, %c0_4] : memref<1x128xf32, #tpu.memory_space<vmem>>, vector<1x128xf32>
    %4 = vector.broadcast %3 : vector<1x128xf32> to vector<16x128xf32>
    %5 = arith.addf %2, %4 : vector<16x128xf32>
    %6 = math.tanh %5 : vector<16x128xf32>
    %7 = arith.truncf %6 : vector<16x128xf32> to vector<16x128xbf16>
    %c0_5 = arith.constant 0 : index
    %c0_6 = arith.constant 0 : index
    %8 = vector.load %arg2[%c0_5, %c0_6] : memref<128x64xbf16, #tpu.memory_space<vmem>>, vector<128x64xbf16>
    %cst_7 = arith.constant dense<0.000000e+00> : vector<16x64xf32>
    %9 = tpu.matmul %7, %8, %cst_7 {dimension_numbers = #tpu.dot_dimension_numbers<[1], [0], [0], [1], [0, 0, 1, 1], [], []>} : vector<16x128xbf16>, vector<128x64xbf16>, vector<16x64xf32> -> vector<16x64xf32>
    %c0_8 = arith.constant 0 : index
    %c0_9 = arith.constant 0 : index
    %10 = vector.load %arg9[%c0_8, %c0_9] : memref<1x64xf32, #tpu.memory_space<vmem>>, vector<1x64xf32>
    %11 = vector.broadcast %10 : vector<1x64xf32> to vector<16x64xf32>
    %12 = arith.addf %9, %11 : vector<16x64xf32>
    %13 = math.tanh %12 : vector<16x64xf32>
    %14 = arith.truncf %13 : vector<16x64xf32> to vector<16x64xbf16>
    %c0_10 = arith.constant 0 : index
    %c0_11 = arith.constant 0 : index
    %15 = vector.load %arg3[%c0_10, %c0_11] : memref<64x32xbf16, #tpu.memory_space<vmem>>, vector<64x32xbf16>
    %cst_12 = arith.constant dense<0.000000e+00> : vector<16x32xf32>
    %16 = tpu.matmul %14, %15, %cst_12 {dimension_numbers = #tpu.dot_dimension_numbers<[1], [0], [0], [1], [0, 0, 1, 1], [], []>} : vector<16x64xbf16>, vector<64x32xbf16>, vector<16x32xf32> -> vector<16x32xf32>
    %c0_13 = arith.constant 0 : index
    %c0_14 = arith.constant 0 : index
    %17 = vector.load %arg10[%c0_13, %c0_14] : memref<1x32xf32, #tpu.memory_space<vmem>>, vector<1x32xf32>
    %18 = vector.broadcast %17 : vector<1x32xf32> to vector<16x32xf32>
    %19 = arith.addf %16, %18 : vector<16x32xf32>
    %20 = math.tanh %19 : vector<16x32xf32>
    %21 = arith.truncf %20 : vector<16x32xf32> to vector<16x32xbf16>
    %c0_15 = arith.constant 0 : index
    %c0_16 = arith.constant 0 : index
    %22 = vector.load %arg4[%c0_15, %c0_16] : memref<32x16xbf16, #tpu.memory_space<vmem>>, vector<32x16xbf16>
    %cst_17 = arith.constant dense<0.000000e+00> : vector<16x16xf32>
    %23 = tpu.matmul %21, %22, %cst_17 {dimension_numbers = #tpu.dot_dimension_numbers<[1], [0], [0], [1], [0, 0, 1, 1], [], []>} : vector<16x32xbf16>, vector<32x16xbf16>, vector<16x16xf32> -> vector<16x16xf32>
    %c0_18 = arith.constant 0 : index
    %c0_19 = arith.constant 0 : index
    %24 = vector.load %arg11[%c0_18, %c0_19] : memref<1x16xf32, #tpu.memory_space<vmem>>, vector<1x16xf32>
    %25 = vector.broadcast %24 : vector<1x16xf32> to vector<16x16xf32>
    %26 = arith.addf %23, %25 : vector<16x16xf32>
    %27 = math.tanh %26 : vector<16x16xf32>
    %28 = arith.truncf %27 : vector<16x16xf32> to vector<16x16xbf16>
    %c0_20 = arith.constant 0 : index
    %c0_21 = arith.constant 0 : index
    %29 = vector.load %arg5[%c0_20, %c0_21] : memref<16x16xbf16, #tpu.memory_space<vmem>>, vector<16x16xbf16>
    %cst_22 = arith.constant dense<0.000000e+00> : vector<16x16xf32>
    %30 = tpu.matmul %28, %29, %cst_22 {dimension_numbers = #tpu.dot_dimension_numbers<[1], [0], [0], [1], [0, 0, 1, 1], [], []>} : vector<16x16xbf16>, vector<16x16xbf16>, vector<16x16xf32> -> vector<16x16xf32>
    %c0_23 = arith.constant 0 : index
    %c0_24 = arith.constant 0 : index
    %31 = vector.load %arg12[%c0_23, %c0_24] : memref<1x16xf32, #tpu.memory_space<vmem>>, vector<1x16xf32>
    %32 = vector.broadcast %31 : vector<1x16xf32> to vector<16x16xf32>
    %33 = arith.addf %30, %32 : vector<16x16xf32>
    %34 = math.tanh %33 : vector<16x16xf32>
    %35 = arith.truncf %34 : vector<16x16xf32> to vector<16x16xbf16>
    %c0_25 = arith.constant 0 : index
    %c0_26 = arith.constant 0 : index
    %36 = vector.load %arg6[%c0_25, %c0_26] : memref<16x16xbf16, #tpu.memory_space<vmem>>, vector<16x16xbf16>
    %cst_27 = arith.constant dense<0.000000e+00> : vector<16x16xf32>
    %37 = tpu.matmul %35, %36, %cst_27 {dimension_numbers = #tpu.dot_dimension_numbers<[1], [0], [0], [1], [0, 0, 1, 1], [], []>} : vector<16x16xbf16>, vector<16x16xbf16>, vector<16x16xf32> -> vector<16x16xf32>
    %c0_28 = arith.constant 0 : index
    %c0_29 = arith.constant 0 : index
    %38 = vector.load %arg13[%c0_28, %c0_29] : memref<1x16xf32, #tpu.memory_space<vmem>>, vector<1x16xf32>
    %39 = vector.broadcast %38 : vector<1x16xf32> to vector<16x16xf32>
    %40 = arith.addf %37, %39 : vector<16x16xf32>
    %41 = math.tanh %40 : vector<16x16xf32>
    %42 = arith.truncf %41 : vector<16x16xf32> to vector<16x16xbf16>
    %c0_30 = arith.constant 0 : index
    %c0_31 = arith.constant 0 : index
    %43 = vector.load %arg7[%c0_30, %c0_31] : memref<16x128xbf16, #tpu.memory_space<vmem>>, vector<16x128xbf16>
    %cst_32 = arith.constant dense<0.000000e+00> : vector<16x128xf32>
    %44 = tpu.matmul %42, %43, %cst_32 {dimension_numbers = #tpu.dot_dimension_numbers<[1], [0], [0], [1], [0, 0, 1, 1], [], []>} : vector<16x16xbf16>, vector<16x128xbf16>, vector<16x128xf32> -> vector<16x128xf32>
    %c0_33 = arith.constant 0 : index
    %c0_34 = arith.constant 0 : index
    %45 = vector.load %arg14[%c0_33, %c0_34] : memref<1x128xf32, #tpu.memory_space<vmem>>, vector<1x128xf32>
    %46 = vector.broadcast %45 : vector<1x128xf32> to vector<16x128xf32>
    %47 = arith.addf %44, %46 : vector<16x128xf32>
    %cst_35 = arith.constant 0.000000e+00 : f32
    %48 = vector.broadcast %cst_35 : f32 to vector<16x128xf32>
    %49 = arith.subf %48, %47 : vector<16x128xf32>
    %50 = math.exp %49 : vector<16x128xf32>
    %cst_36 = arith.constant 1.000000e+00 : f32
    %51 = vector.broadcast %cst_36 : f32 to vector<16x128xf32>
    %52 = arith.addf %51, %50 : vector<16x128xf32>
    %53 = tpu.reciprocal %52 {approx = true} : vector<16x128xf32> -> vector<16x128xf32>
    %c0_37 = arith.constant 0 : index
    %c0_38 = arith.constant 0 : index
    %54 = vector.load %arg15[%c0_37, %c0_38] : memref<16x128xf32, #tpu.memory_space<vmem>>, vector<16x128xf32>
    tpu.vector_store %arg15[%c0_37, %c0_38], %53 {strides = array<i32>} : memref<16x128xf32, #tpu.memory_space<vmem>>, vector<16x128xf32>,
    return
  }
}

</mosaic_0001>

<bundles_post_ra>
// kernel: forward.1
= control target key start
LH: loop header
LB: loop body
LE: loop exit
PB: predicated region body
PF: predicated region fallthrough
CT: control target
= control target key end

     0   :  { %20 = vsyncpa [#allocation3], 0  ;;  %s896_s0 = inlined_call_operand.vmem [shape: bf16[16,32], index: 0, kind: input, shape index: {}]   ;;  %s897_s1 = inlined_call_operand.hbm [shape: bf16[32,128], index: 1, kind: input, shape index: {}]   ;;  %s898_s2 = inlined_call_operand.hbm [shape: bf16[128,64], index: 2, kind: input, shape index: {}]   ;;  %s899_s3 = inlined_call_operand.hbm [shape: bf16[64,32], index: 3, kind: input, shape index: {}]   ;;  %s900_s4 = inlined_call_operand.vmem [shape: bf16[32,16], index: 4, kind: input, shape index: {}]   ;;  %s901_s5 = inlined_call_operand.hbm [shape: bf16[16,16], index: 5, kind: input, shape index: {}]   ;;  %s902_s6 = inlined_call_operand.hbm [shape: bf16[16,16], index: 6, kind: input, shape index: {}]   ;;  %s903_s7 = inlined_call_operand.vmem [shape: bf16[16,128], index: 7, kind: input, shape index: {}]   ;;  %s904_s8 = inlined_call_operand.vmem [shape: f32[1,128], index: 8, kind: input, shape index: {}]   ;;  %s905_s9 = inlined_call_operand.vmem [shape: f32[1,64], index: 9, kind: input, shape index: {}]   ;;  %s906_s10 = inlined_call_operand.vmem [shape: f32[1,32], index: 10, kind: input, shape index: {}]   ;;  %s907_s11 = inlined_call_operand.vmem [shape: f32[1,16], index: 11, kind: input, shape index: {}]   ;;  %s908_s12 = inlined_call_operand.vmem [shape: f32[1,16], index: 12, kind: input, shape index: {}]   ;;  %s909_s13 = inlined_call_operand.vmem [shape: f32[1,16], index: 13, kind: input, shape index: {}]   ;;  %s910_s14 = inlined_call_operand.vmem [shape: f32[1,128], index: 14, kind: input, shape index: {}]   ;;  %s911_s15 = inlined_call_operand.vmem [shape: f32[16,128], index: 15, kind: output, shape index: {}]  }
   0x1   :  { %21 = vsyncpa [#allocation5], 0 }
   0x2   :  { %22 = vsyncpa [#allocation8], 0  ;;  %s42_s20 = sshll.u32 %s898_s2, 4  ;;  %s750_s21 = smov [#allocation4]   ;;  %s43_s20 = int_to_ptr.hbm [resolvable:$true] %s42_s20 }
   0x3   :  { %s44_s22 = sshll.u32 %s750_s21, 4  ;;  %s70_s25 = sshll.u32 %s901_s5, 4  ;;  %s45_s22 = int_to_ptr.vmem [resolvable:$true] %s44_s22  ;;  %s71_s25 = int_to_ptr.hbm [resolvable:$true] %s70_s25 }
   0x4   :  { %s751_s26 = smov 64   ;;  %s752_s27 = smov 4  }
   0x5   :  { %50 = dma.hbm_to_vmem [thread:$0]  %s43_s20, 1024, %s45_s22, [#allocation5], %s751_s26, %s751_s26, %s752_s27  }
   0x6   :  { %s753_s28 = smov [#allocation7]   ;;  %s29_s17 = sshll.u32 %s897_s1, 4  ;;  %s30_s17 = int_to_ptr.hbm [resolvable:$true] %s29_s17 }
   0x7   :  { %s72_s29 = sshll.u32 %s753_s28, 4  ;;  %s55_s19 = sshll.u32 %s899_s3, 4  ;;  %s73_s29 = int_to_ptr.vmem [resolvable:$true] %s72_s29  ;;  %s56_s19 = int_to_ptr.hbm [resolvable:$true] %s55_s19 }
   0x8   :  { %78 = dma.hbm_to_vmem [thread:$0]  %s71_s25, 128, %s73_s29, [#allocation8], %s751_s26, %s751_s26, %s752_s27  }
   0x9   :  { %s754_s21 = smov [#allocation2]   ;;  %s755_s5 = smov [#allocation6]  }
   0xa   :  { %s31_s23 = sshll.u32 %s754_s21, 4  ;;  %s57_s20 = sshll.u32 %s755_s5, 4  ;;  %s32_s23 = int_to_ptr.vmem [resolvable:$true] %s31_s23  ;;  %s58_s20 = int_to_ptr.vmem [resolvable:$true] %s57_s20 }
   0xb   :  { %37 = dma.hbm_to_vmem [thread:$0]  %s30_s17, 256, %s32_s23, [#allocation3], %s751_s26, %s751_s26, %s752_s27  }
   0xc   :  { %s83_s28 = sshll.u32 %s902_s6, 4  ;;  %s756_s1 = smov [#allocation9]   ;;  %s84_s28 = int_to_ptr.hbm [resolvable:$true] %s83_s28 }
   0xd   :  { %63 = dma.hbm_to_vmem [thread:$0]  %s56_s19, 512, %s58_s20, [#allocation5], %s751_s26, %s751_s26, %s752_s27  }
   0xe   :  { %s85_s25 = sshll.u32 %s756_s1, 4  ;;  %s86_s25 = int_to_ptr.vmem [resolvable:$true] %s85_s25 }
   0xf   :  { %91 = dma.hbm_to_vmem [thread:$0]  %s84_s28, 128, %s86_s25, [#allocation8], %s751_s26, %s751_s26, %s752_s27  }
  0x10   :  { %744 = dma.done.wait [#allocation3], 256  }
  0x11   :  { %745 = vsyncadd [#allocation3], 4294967040 }
  0x12   :  { %746 = dma.done.wait [#allocation5], 1536  }
  0x13   :  { %747 = vsyncadd [#allocation5], 4294965760 }
  0x14   :  { %748 = dma.done.wait [#allocation8], 256  }
  0x15   :  { %749 = vsyncadd [#allocation8], 4294967040  ;;  %v560_v0 = vld [vmem:[#allocation2 + $0x8] sm:$0xff]  ;;  %v559_v1 = vld [vmem:[#allocation2] sm:$0xff]  ;;  %vm156_vm0 = vcmask 261120   ;;  %vm298_vm1 = vcmask 523264  }
  0x16   :  { %v568_v2 = vld [vmem:[#allocation4 + $0x38] sm:$0xff]  ;;  %166 = vmatpush.bf16.msra.mxu0 %v560_v0  ;;  %v567_v3 = vld [vmem:[#allocation4 + $0x30] sm:$0xff]  ;;  %v566_v5 = vld [vmem:[#allocation4 + $0x28] sm:$0xff]  ;;  %vm371_vm2 = vcmask 130048  }
  0x17   :  { %245 = vmatpush.bf16.msra.mxu1 %v568_v2  ;;  %v558_v4 = vld [vmem:[%s896_s0] sm:$0xff]  ;;  %v565_v6 = vld [vmem:[#allocation4 + $0x20] sm:$0xff]  ;;  %v564_v7 = vld [vmem:[#allocation4 + $0x18] sm:$0xff] }
  0x18   :  { %v563_v8 = vld [vmem:[#allocation4 + $0x10] sm:$0xff]  ;;  %v562_v9 = vld [vmem:[#allocation4 + $0x8] sm:$0xff]  ;;  %v561_v10 = vld [vmem:[#allocation4] sm:$0xff] }
  0x19   :  { %v585_v12 = vld [vmem:[%s904_s8] ss:$0 sm:$0xff]  ;;  %v572_v19 = vld [vmem:[#allocation6 + $0x18] sm:$0xff]  ;;  %v570_v21 = vld [vmem:[#allocation6 + $0x8] sm:$0xff] }
  0x1a   :  { %167 = vmatpush.bf16.msra.mxu0 %v559_v1  ;;  %306 = vmatpush.bf16.msra.mxu2 %v572_v19  ;;  %v571_v20 = vld [vmem:[#allocation6 + $0x10] sm:$0xff]  ;;  %v569_v22 = vld [vmem:[#allocation6] sm:$0xff]  ;;  %v574_v31 = vld [vmem:[%s900_s4 + $0x8] sm:$0xff] }
  0x1b   :  { %246 = vmatpush.bf16.msra.mxu1 %v567_v3  ;;  %v586_v24 = vld [vmem:[%s905_s9] ss:$0 sm:$0xff]  ;;  %348 = vmatpush.bf16.msra.mxu3 %v574_v31  ;;  %v575_v41 = vld [vmem:[#allocation7] sm:$0xff]  ;;  %v576_v50 = vld [vmem:[#allocation9] sm:$0xff] }
  0x1c   :  { %v573_v32 = vld [vmem:[%s900_s4] sm:$0xff] }
  0x1d   :  { %484 = vmatmul.msk.bf16.vlgmr.msra.gmra.mxu0 %vm156_vm0, %v558_v4  ;;  %v587_v34 = vld [vmem:[%s906_s10] ss:$0 sm:$0xff] }
  0x1e   :  { %307 = vmatpush.bf16.msra.mxu2 %v571_v20  ;;  %382 = vmatpush.bf16.msrb.mxu0 %v575_v41  ;;  %v588_v43 = vld [vmem:[%s907_s11] ss:$0 sm:$0xff] }
  0x1f   :  { %247 = vmatpush.bf16.msra.mxu1 %v566_v5  ;;  %349 = vmatpush.bf16.msra.mxu3 %v573_v32  ;;  %v589_v52 = vld [vmem:[%s908_s12] ss:$0 sm:$0xff] }
  0x20   :  { %v577_v59 = vld [vmem:[%s903_s7] sm:$0xff] }
  0x21   :  { %v590_v61 = vld [vmem:[%s909_s13] ss:$0 sm:$0xff] }
  0x22   :  { %308 = vmatpush.bf16.msra.mxu2 %v570_v21  ;;  %v591_v4 = vld [vmem:[%s910_s14] ss:$0 sm:$0xff] }
  0x23   :  { %248 = vmatpush.bf16.msra.mxu1 %v565_v6  ;;  %414 = vmatpush.bf16.msrb.mxu3 %v576_v50 }
  0x26   :  { %309 = vmatpush.bf16.msra.mxu2 %v569_v22 }
  0x27   :  { %249 = vmatpush.bf16.msra.mxu1 %v564_v7 }
  0x2a   :  { %446 = vmatpush.bf16.msrb.mxu2 %v577_v59 }
  0x2b   :  { %250 = vmatpush.bf16.msra.mxu1 %v563_v8 }
  0x2f   :  { %251 = vmatpush.bf16.msra.mxu1 %v562_v9 }
  0x33   :  { %252 = vmatpush.bf16.msra.mxu1 %v561_v10 }
  0x9a   :  { %v169_v11 = vpop.f32.mrf.mxu0 }
  0x9b   :  { %v170_v13 = vadd.f32 %v585_v12, %v169_v11 }
  0x9d   :  { %592 = vtanh.f32 %v170_v13 }
  0xa2   :  { %v171_v14 = vpop.f32.mrf.mxu0 }
  0xa3   :  { %v172_v15 = vadd.f32 %v585_v12, %v171_v14  ;;  %v593_v16 = vpop.eup %592 }
  0xa5   :  { %594 = vtanh.f32 %v172_v15 }
  0xab   :  { %v595_v17 = vpop.eup %594 }
  0xac   :  { %v176_v18 = vpack.c.bf16 %v595_v17, %v593_v16 }
  0xae   :  { %253 = vmatmul.bf16.vlgmr.msra.gmra.mxu1 %v176_v18 }
 0x12b   :  { %v254_v23 = vpop.f32.mrf.mxu1 }
 0x12c   :  { %v255_v25 = vadd.f32 %v586_v24, %v254_v23 }
 0x12e   :  { %596 = vtanh.f32 %v255_v25 }
 0x133   :  { %v256_v26 = vpop.f32.mrf.mxu1 }
 0x134   :  { %v257_v27 = vadd.f32 %v586_v24, %v256_v26  ;;  %v597_v28 = vpop.eup %596 }
 0x136   :  { %598 = vtanh.f32 %v257_v27 }
 0x13c   :  { %v599_v29 = vpop.eup %598 }
 0x13d   :  { %v261_v30 = vpack.c.bf16 %v599_v29, %v597_v28 }
 0x13f   :  { %533 = vmatmul.msk.bf16.vlgmr.msra.gmra.mxu2 %vm298_vm1, %v261_v30 }
 0x1c2   :  { %v311_v33 = vpop.f32.mrf.mxu2 }
 0x1c3   :  { %v312_v35 = vadd.f32 %v587_v34, %v311_v33 }
 0x1c5   :  { %600 = vtanh.f32 %v312_v35 }
 0x1ca   :  { %v313_v36 = vpop.f32.mrf.mxu2 }
 0x1cb   :  { %v314_v37 = vadd.f32 %v587_v34, %v313_v36  ;;  %v601_v38 = vpop.eup %600 }
 0x1cd   :  { %602 = vtanh.f32 %v314_v37 }
 0x1d3   :  { %v603_v39 = vpop.eup %602 }
 0x1d4   :  { %v318_v40 = vpack.c.bf16 %v603_v39, %v601_v38 }
 0x1d6   :  { %542 = vmatmul.msk.bf16.vlgmr.msra.gmra.mxu3 %vm156_vm0, %v318_v40 }
 0x259   :  { %v351_v42 = vpop.f32.mrf.mxu3 }
 0x25a   :  { %v352_v44 = vadd.f32 %v588_v43, %v351_v42 }
 0x25c   :  { %604 = vtanh.f32 %v352_v44 }
 0x261   :  { %v353_v45 = vpop.f32.mrf.mxu3 }
 0x262   :  { %v354_v46 = vadd.f32 %v588_v43, %v353_v45  ;;  %v605_v47 = vpop.eup %604 }
 0x264   :  { %606 = vtanh.f32 %v354_v46 }
 0x26a   :  { %v607_v48 = vpop.eup %606 }
 0x26b   :  { %v358_v49 = vpack.c.bf16 %v607_v48, %v605_v47 }
 0x26d   :  { %547 = vmatmul.msk.bf16.vlgmr.msrb.gmra.mxu0 %vm371_vm2, %v358_v49 }
 0x2ea   :  { %v384_v51 = vpop.f32.mrf.mxu0 }
 0x2eb   :  { %v385_v53 = vadd.f32 %v589_v52, %v384_v51 }
 0x2ed   :  { %608 = vtanh.f32 %v385_v53 }
 0x2f2   :  { %v386_v54 = vpop.f32.mrf.mxu0 }
 0x2f3   :  { %v387_v55 = vadd.f32 %v589_v52, %v386_v54  ;;  %v609_v56 = vpop.eup %608 }
 0x2f5   :  { %610 = vtanh.f32 %v387_v55 }
 0x2fb   :  { %v611_v57 = vpop.eup %610 }
 0x2fc   :  { %v391_v58 = vpack.c.bf16 %v611_v57, %v609_v56 }
 0x2fe   :  { %552 = vmatmul.msk.bf16.vlgmr.msrb.gmra.mxu3 %vm371_vm2, %v391_v58 }
 0x381   :  { %v416_v60 = vpop.f32.mrf.mxu3 }
 0x382   :  { %v417_v62 = vadd.f32 %v590_v61, %v416_v60 }
 0x384   :  { %612 = vtanh.f32 %v417_v62 }
 0x389   :  { %v418_v63 = vpop.f32.mrf.mxu3 }
 0x38a   :  { %v419_v0 = vadd.f32 %v590_v61, %v418_v63  ;;  %v613_v1 = vpop.eup %612 }
 0x38c   :  { %614 = vtanh.f32 %v419_v0 }
 0x392   :  { %v615_v2 = vpop.eup %614 }
 0x393   :  { %v423_v3 = vpack.c.bf16 %v615_v2, %v613_v1 }
 0x395   :  { %557 = vmatmul.msk.bf16.vlgmr.msrb.gmra.mxu2 %vm371_vm2, %v423_v3 }
 0x418   :  { %v448_v5 = vpop.f32.mrf.mxu2 }
 0x419   :  { %v449_v6 = vadd.f32 %v591_v4, %v448_v5 }
 0x41b   :  { %v453_v7 = vsub.f32 0.0, %v449_v6 }
 0x41d   :  { %v455_v8 = vmul.f32 1.442695, %v453_v7 }
 0x41f   :  { %616 = vpow2.f32 %v455_v8 }
 0x420   :  { %v450_v9 = vpop.f32.mrf.mxu2 }
 0x421   :  { %v451_v10 = vadd.f32 %v591_v4, %v450_v9 }
 0x423   :  { %v454_v11 = vsub.f32 0.0, %v451_v10 }
 0x425   :  { %v617_v12 = vpop.eup %616  ;;  %v457_v13 = vmul.f32 1.442695, %v454_v11 }
 0x426   :  { %v459_v14 = vadd.f32 1.0, %v617_v12 }
 0x427   :  { %618 = vpow2.f32 %v457_v13 }
 0x428   :  { %620 = vrcp.f32 %v459_v14 }
 0x42d   :  { %v619_v15 = vpop.eup %618 }
 0x42e   :  { %v621_v16 = vpop.eup %620  ;;  %v460_v17 = vadd.f32 1.0, %v619_v15 }
 0x42f   :  { %463 = vst [vmem:[%s911_s15] sm:$0xff] %v621_v16 }
 0x430   :  { %622 = vrcp.f32 %v460_v17 }
 0x436   :  { %v623_v18 = vpop.eup %622 }
 0x437   :  { %464 = vst [vmem:[%s911_s15 + $0x8] sm:$0xff] %v623_v18 }
 0x438   :  { %469 = vsyncpa [#allocation3], 1 }
 0x439   :  { %470 = vsyncpa [#allocation5], 1 }
 0x43a   :  { %471 = vsyncpa [#allocation8], 1 }

</bundles_post_ra>
